<compile_context>
chip_gen: v7x
topology: tpu7x:2x2x1
jax: 0.10.0
libtpu: 0.0.40
codegen_flags: <defaults>
</compile_context>

<pallas_src>
import functools

import jax
import jax.numpy as jnp
from jax.experimental import pallas as pl
from jax.experimental.pallas import tpu as pltpu

EPS = 1e-3


def _bn_kernel(x_ref, p_ref, o_ref, *, true_l):
    # x_ref: (TC, L) f32 ; p_ref: (TC, 2) f32 [gamma | beta] ; o_ref: (TC, L)
    inv_l = 1.0 / float(true_l)

    # ---- stats phase: one read of the tile ----
    x = x_ref[...]
    s = jnp.sum(x, axis=-1, keepdims=True)            # (TC, 1)
    ss = jnp.sum(x * x, axis=-1, keepdims=True)       # (TC, 1)
    mean = s * inv_l
    var = jnp.maximum(ss * inv_l - mean * mean, 0.0)   # biased var, clamped

    gamma = p_ref[:, 0:1]                              # (TC, 1)
    beta = p_ref[:, 1:2]                               # (TC, 1)

    inv = jax.lax.rsqrt(var + EPS)                     # EUP
    scale = gamma * inv                                # (TC, 1)
    shift = beta - mean * scale                        # (TC, 1)

    # ---- elementwise phase: re-read from VMEM (don't keep `x` live) ----
    o_ref[...] = x_ref[...] * scale + shift


def _num_tensorcores_per_chip():
    # 2 TCs/chip only on v7x-class parts; v5e/v6e have a single TensorCore.
    try:
        kind = jax.devices()[0].device_kind.lower()
        if "v7" in kind:
            return 2
    except Exception:
        pass
    return 1


def _pick_c_tile(c):
    # Split channels across 2 grid steps only when a second TensorCore can
    # actually take the other half (and halves stay 8-aligned).
    if _num_tensorcores_per_chip() == 2 and c % 16 == 0:
        return c // 2
    return c


def batchnorm2d(x_nchw, weight, bias):
    """Training-mode BatchNorm2d forward.

    x_nchw: (N, C, H, W) float32; weight/bias: (C,) float32.
    """
    n, c, h, w = x_nchw.shape
    l = n * h * w

    if n == 1:
        # Pure reshape (guaranteed bitcast), no transpose.
        x2d = x_nchw[0].reshape(c, h * w)
    else:
        # TODO(synk): for N>1, tile the lane axis with an 'arbitrary' grid dim
        # and accumulate s/ss in scratch instead of this transpose + one-block
        # design (which also needs VMEM sizing per generation).
        x2d = jnp.transpose(x_nchw, (1, 0, 2, 3)).reshape(c, l)

    # Pack gamma/beta into one (C, 2) array: one small DMA instead of two.
    params = jnp.stack([weight, bias], axis=1).astype(jnp.float32)  # (C, 2)

    tc = _pick_c_tile(c)
    grid = (c // tc,)

    kernel = functools.partial(_bn_kernel, true_l=l)

    out2d = pl.pallas_call(
        kernel,
        out_shape=jax.ShapeDtypeStruct((c, l), x2d.dtype),
        grid_spec=pltpu.PrefetchScalarGridSpec(
            num_scalar_prefetch=0,
            grid=grid,
            in_specs=[
                # Full-extent last dim => exempt from the 128-lane rule.
                pl.BlockSpec((tc, l), lambda i: (i, 0)),
                pl.BlockSpec((tc, 2), lambda i: (i, 0)),
            ],
            out_specs=pl.BlockSpec((tc, l), lambda i: (i, 0)),
        ),
        compiler_params=pltpu.CompilerParams(
            dimension_semantics=("parallel",),
        ),
    )(x2d, params)

    if n == 1:
        return out2d.reshape(1, c, h, w)
    return jnp.transpose(out2d.reshape(c, n, h, w), (1, 0, 2, 3))


if __name__ == "__main__":
    key = jax.random.PRNGKey(0)
    kx, kw, kb = jax.random.split(key, 3)

    # Shapes from the original module: x348 = randn(1, 160, 14, 14)
    N, C, H, W = 1, 160, 14, 14
    x = jax.random.normal(kx, (N, C, H, W), dtype=jnp.float32)
    # deterministic, nontrivial affine params (PyTorch default is gamma=1, beta=0)
    gamma = 1.0 + 0.1 * jax.random.normal(kw, (C,), dtype=jnp.float32)
    beta = 0.1 * jax.random.normal(kb, (C,), dtype=jnp.float32)

    out = batchnorm2d(x, gamma, beta)
    out = jax.block_until_ready(out)

    # reference: training-mode batchnorm with batch statistics
    mean = jnp.mean(x, axis=(0, 2, 3), keepdims=True)
    var = jnp.mean((x - mean) ** 2, axis=(0, 2, 3), keepdims=True)
    ref = (x - mean) / jnp.sqrt(var + EPS) * gamma.reshape(1, C, 1, 1) + beta.reshape(1, C, 1, 1)
    assert jnp.max(jnp.abs(out - ref)) < 1e-4, "mismatch vs reference"

    print("KERNEL_OK")
</pallas_src>

<mosaic_0001>
module attributes {stable_mosaic.version = 11 : i64} {
  func.func @_bn_kernel(%arg0: i32, %arg1: memref<160x196xf32, #tpu.memory_space<vmem>>, %arg2: memref<160x2xf32, #tpu.memory_space<vmem>>, %arg3: memref<160x196xf32, #tpu.memory_space<vmem>>) attributes {dimension_semantics = [#tpu.dimension_semantics<parallel>], iteration_bounds = array<i64: 1>, scalar_prefetch = 0 : i64, scratch_operands = 0 : i64, tpu.core_type = #tpu.core_type<tc>, window_params = [{transform_indices = @transform_0, window_bounds = array<i64: 160, 196>}, {transform_indices = @transform_1, window_bounds = array<i64: 160, 2>}, {transform_indices = @transform_2, window_bounds = array<i64: 160, 196>}]} {
    %c0 = arith.constant 0 : index
    %c0_0 = arith.constant 0 : index
    %0 = vector.load %arg1[%c0, %c0_0] : memref<160x196xf32, #tpu.memory_space<vmem>>, vector<160x196xf32>
    %cst = arith.constant dense<0.000000e+00> : vector<160xf32>
    %1 = vector.multi_reduction <add>, %0, %cst [1] : vector<160x196xf32> to vector<160xf32>
    %2 = vector.shape_cast %1 : vector<160xf32> to vector<160x1xf32>
    %3 = arith.mulf %0, %0 : vector<160x196xf32>
    %cst_1 = arith.constant dense<0.000000e+00> : vector<160xf32>
    %4 = vector.multi_reduction <add>, %3, %cst_1 [1] : vector<160x196xf32> to vector<160xf32>
    %5 = vector.shape_cast %4 : vector<160xf32> to vector<160x1xf32>
    %cst_2 = arith.constant 0.00510204071 : f32
    %6 = vector.broadcast %cst_2 : f32 to vector<160x1xf32>
    %7 = arith.mulf %2, %6 : vector<160x1xf32>
    %cst_3 = arith.constant 0.00510204071 : f32
    %8 = vector.broadcast %cst_3 : f32 to vector<160x1xf32>
    %9 = arith.mulf %5, %8 : vector<160x1xf32>
    %10 = arith.mulf %7, %7 : vector<160x1xf32>
    %11 = arith.subf %9, %10 : vector<160x1xf32>
    %cst_4 = arith.constant 0.000000e+00 : f32
    %12 = vector.broadcast %cst_4 : f32 to vector<160x1xf32>
    %13 = arith.maximumf %11, %12 : vector<160x1xf32>
    %c0_5 = arith.constant 0 : index
    %c0_6 = arith.constant 0 : index
    %14 = vector.load %arg2[%c0_5, %c0_6] : memref<160x2xf32, #tpu.memory_space<vmem>>, vector<160x1xf32>
    %c0_7 = arith.constant 0 : index
    %c1 = arith.constant 1 : index
    %15 = vector.load %arg2[%c0_7, %c1] : memref<160x2xf32, #tpu.memory_space<vmem>>, vector<160x1xf32>
    %cst_8 = arith.constant 1.000000e-03 : f32
    %16 = vector.broadcast %cst_8 : f32 to vector<160x1xf32>
    %17 = arith.addf %13, %16 : vector<160x1xf32>
    %18 = math.rsqrt %17 : vector<160x1xf32>
    %19 = arith.mulf %14, %18 : vector<160x1xf32>
    %20 = arith.mulf %7, %19 : vector<160x1xf32>
    %21 = arith.subf %15, %20 : vector<160x1xf32>
    %c0_9 = arith.constant 0 : index
    %c0_10 = arith.constant 0 : index
    %22 = vector.load %arg1[%c0_9, %c0_10] : memref<160x196xf32, #tpu.memory_space<vmem>>, vector<160x196xf32>
    %23 = vector.broadcast %19 : vector<160x1xf32> to vector<160x196xf32>
    %24 = arith.mulf %22, %23 : vector<160x196xf32>
    %25 = vector.broadcast %21 : vector<160x1xf32> to vector<160x196xf32>
    %26 = arith.addf %24, %25 : vector<160x196xf32>
    %c0_11 = arith.constant 0 : index
    %c0_12 = arith.constant 0 : index
    %27 = vector.load %arg3[%c0_11, %c0_12] : memref<160x196xf32, #tpu.memory_space<vmem>>, vector<160x196xf32>
    tpu.vector_store %arg3[%c0_11, %c0_12], %26 {strides = array<i32>} : memref<160x196xf32, #tpu.memory_space<vmem>>, vector<160x196xf32>,
    return
  }
  func.func @transform_0(%arg0: i32) -> (i32, i32) {
    %c0_i32 = arith.constant 0 : i32
    %c0_i32_0 = arith.constant 0 : i32
    return %arg0, %c0_i32 : i32, i32
  }
  func.func @transform_1(%arg0: i32) -> (i32, i32) {
    %c0_i32 = arith.constant 0 : i32
    %c0_i32_0 = arith.constant 0 : i32
    return %arg0, %c0_i32 : i32, i32
  }
  func.func @transform_2(%arg0: i32) -> (i32, i32) {
    %c0_i32 = arith.constant 0 : i32
    %c0_i32_0 = arith.constant 0 : i32
    return %arg0, %c0_i32 : i32, i32
  }
}

</mosaic_0001>

<bundles_post_ra>
// kernel: tpu_custom_call.1
= control target key start
LH: loop header
LB: loop body
LE: loop exit
PB: predicated region body
PF: predicated region fallthrough
CT: control target
= control target key end

     0   :  { %7 = vsyncpa [#allocation3], 0  ;;  %s1757_s0 = inlined_call_operand.hbm [shape: f32[160,196], index: 0, kind: input, shape index: {}]   ;;  %s1758_s1 = inlined_call_operand.vmem [shape: f32[160,2], index: 1, kind: input, shape index: {}]   ;;  %s1759_s2 = inlined_call_operand.hbm [shape: f32[160,196], index: 2, kind: output, shape index: {}]  }
   0x1   :  { %8 = vsyncpa [#allocation4], 0  ;;  %s1043_s9 = smov [#allocation2]   ;;  %s995_s13 = scalar_lea.hbm %s1757_s0, 5120 }
   0x2   :  { %s14_s10 = sshll.u32 %s1043_s9, 4  ;;  %p996_p0 = scmp.ne.s32.totalorder %s1757_s0, %s995_s13  ;;  %s15_s10 = int_to_ptr.vmem [resolvable:$true] %s14_s10 }
   0x3   :  { %p999_p1 = scmp.lt.u32.totalorder %s995_s13, %s1757_s0 }
   0x5   :  { %p1001_p2 = pnand %p999_p1, %p996_p0 }
   0x7   :  { %1004 = shalt.err (!%p1001_p2)
}
   0x8   :  { %s1005_s18 = scalar_lea.vmem %s15_s10, 5120  ;;  %p1010_p4 = scmp.lt.s32.totalorder %s15_s10, %s15_s10 }
   0x9   :  { %p1006_p3 = scmp.ne.s32.totalorder %s15_s10, %s1005_s18  ;;  %p1011_p5 = scmp.lt.s32.totalorder %s1005_s18, %s1005_s18 }
   0xb   :  { %p1012_p6 = por %p1011_p5, %p1010_p4 }
   0xd   :  { %p1013_p7 = pnand %p1012_p6, %p1006_p3 }
   0xf   :  { %1016 = shalt.err (!%p1013_p7)
}
  0x10   :  { %s1044_s19 = smov 256   ;;  %s1045_s20 = smov 16  }
  0x11   :  { %20 = dma.hbm_to_vmem [thread:$0]  %s1757_s0, 5120, %s15_s10, [#allocation3], %s1044_s19, %s1044_s19, %s1045_s20  }
  0x12   :  { %1039 = dma.done.wait [#allocation3], 5120  }
  0x13   :  { %1040 = vsyncadd [#allocation3], 4294962176  ;;  %vm66_vm0 = vcmask 556032   ;;  %v1080_v0 = vld [vmem:[#allocation2 + $0x20] sm:$0xff]  ;;  %v1082_v1 = vld [vmem:[#allocation2 + $0x28] sm:$0xff]  ;;  %s1047_s16 = smov 1  }
  0x14   :  { %v1084_v2 = vld [vmem:[#allocation2] sm:$0xff]  ;;  %v75_v3 = vsel %vm66_vm0, %v1082_v1, 0.0  ;;  %v1088_v4 = vld [vmem:[#allocation2 + $0x8] sm:$0xff]  ;;  %v1090_v5 = vld [vmem:[#allocation2 + $0x30] sm:$0xff] }
  0x15   :  { %v1092_v6 = vld [vmem:[#allocation2 + $0x38] sm:$0xff]  ;;  %v76_v7 = vadd.f32 %v75_v3, %v1080_v0  ;;  %v67_v8 = vsel %vm66_vm0, %v1088_v4, 0.0  ;;  %v1099_v10 = vld [vmem:[#allocation2 + $0x10] sm:$0xff]  ;;  %v1108_v15 = vld [vmem:[#allocation2 + $0x48] sm:$0xff] }
  0x16   :  { %v79_v9 = vsel %vm66_vm0, %v1092_v6, 0.0  ;;  %v1101_v11 = vld [vmem:[#allocation2 + $0x18] sm:$0xff]  ;;  %v68_v12 = vadd.f32 %v67_v8, %v1084_v2  ;;  %v1112_v18 = vld [vmem:[#allocation2 + $0x50] sm:$0xff]  ;;  %v1116_v20 = vld [vmem:[#allocation2 + $0x40] sm:$0xff]  ;;  %v83_v21 = vsel %vm66_vm0, %v1108_v15, 0.0 }
  0x17   :  { %v71_v13 = vsel %vm66_vm0, %v1101_v11, 0.0  ;;  %v1106_v14 = vld [vmem:[#allocation2 + $0x58] sm:$0xff]  ;;  %77 = vadd.xlane.f32.xlu1 %v76_v7  ;;  %v80_v16 = vadd.f32 %v79_v9, %v1090_v5  ;;  %v1122_v23 = vld [vmem:[#allocation2 + $0x68] sm:$0xff]  ;;  %v84_v25 = vadd.f32 %v83_v21, %v1116_v20  ;;  %v1126_v26 = vld [vmem:[#allocation2 + $0x70] sm:$0xff] }
  0x18   :  { %69 = vadd.xlane.f32.xlu0 %v68_v12  ;;  %v72_v17 = vadd.f32 %v71_v13, %v1099_v10  ;;  %v87_v19 = vsel %vm66_vm0, %v1106_v14, 0.0  ;;  %v1120_v22 = vld [vmem:[#allocation2 + $0x78] sm:$0xff]  ;;  %v1130_v28 = vld [vmem:[#allocation2 + $0x60] sm:$0xff]  ;;  %v91_v29 = vsel %vm66_vm0, %v1122_v23, 0.0  ;;  %v1136_v31 = vld [vmem:[#allocation2 + $0x88] sm:$0xff] }
  0x19   :  { %v88_v24 = vadd.f32 %v87_v19, %v1112_v18  ;;  %v95_v27 = vsel %vm66_vm0, %v1120_v22, 0.0  ;;  %v1134_v30 = vld [vmem:[#allocation2 + $0x98] sm:$0xff]  ;;  %v92_v33 = vadd.f32 %v91_v29, %v1130_v28  ;;  %v1140_v34 = vld [vmem:[#allocation2 + $0x90] sm:$0xff]  ;;  %v1144_v36 = vld [vmem:[#allocation2 + $0x80] sm:$0xff]  ;;  %v99_v37 = vsel %vm66_vm0, %v1136_v31, 0.0 }
  0x1a   :  { %v96_v32 = vadd.f32 %v95_v27, %v1126_v26  ;;  %v103_v35 = vsel %vm66_vm0, %v1134_v30, 0.0  ;;  %v1148_v38 = vld [vmem:[#allocation2 + $0xb8] sm:$0xff]  ;;  %v1150_v39 = vld [vmem:[#allocation2 + $0xa8] sm:$0xff]  ;;  %v100_v41 = vadd.f32 %v99_v37, %v1144_v36  ;;  %v1154_v42 = vld [vmem:[#allocation2 + $0xb0] sm:$0xff]  ;;  %v150_v27 = vmul.f32 %v1101_v11, %v1101_v11 }
  0x1b   :  { %81 = vadd.xlane.f32.xlu1 %v80_v16  ;;  %v104_v40 = vadd.f32 %v103_v35, %v1140_v34  ;;  %v111_v43 = vsel %vm66_vm0, %v1148_v38, 0.0  ;;  %v1158_v44 = vld [vmem:[#allocation2 + $0xa0] sm:$0xff]  ;;  %v107_v45 = vsel %vm66_vm0, %v1150_v39, 0.0  ;;  %v1162_v46 = vld [vmem:[#allocation2 + $0xd8] sm:$0xff]  ;;  %v1164_v47 = vld [vmem:[#allocation2 + $0xc8] sm:$0xff]  ;;  %v149_v37 = vmul.f32 %v1099_v10, %v1099_v10 }
  0x1c   :  { %73 = vadd.xlane.f32.xlu0 %v72_v17  ;;  %v112_v48 = vadd.f32 %v111_v43, %v1154_v42  ;;  %v108_v49 = vadd.f32 %v107_v45, %v1158_v44  ;;  %v1168_v50 = vld [vmem:[#allocation2 + $0xd0] sm:$0xff]  ;;  %v119_v51 = vsel %vm66_vm0, %v1162_v46, 0.0  ;;  %v1172_v52 = vld [vmem:[#allocation2 + $0xc0] sm:$0xff]  ;;  %v115_v53 = vsel %vm66_vm0, %v1164_v47, 0.0  ;;  %v1176_v54 = vld [vmem:[#allocation2 + $0xf8] sm:$0xff] }
  0x1d   :  { %v1178_v55 = vld [vmem:[#allocation2 + $0xe8] sm:$0xff]  ;;  %v120_v56 = vadd.f32 %v119_v51, %v1168_v50  ;;  %v116_v57 = vadd.f32 %v115_v53, %v1172_v52  ;;  %v1182_v58 = vld [vmem:[#allocation2 + $0xf0] sm:$0xff]  ;;  %v127_v59 = vsel %vm66_vm0, %v1176_v54, 0.0  ;;  %v1186_v60 = vld [vmem:[#allocation2 + $0xe0] sm:$0xff]  ;;  %v147_v11 = vmul.f32 %v1084_v2, %v1084_v2 }
  0x1e   :  { %v123_v61 = vsel %vm66_vm0, %v1178_v55, 0.0  ;;  %v1190_v62 = vld [vmem:[#allocation2 + $0x118] sm:$0xff]  ;;  %v1192_v63 = vld [vmem:[#allocation2 + $0x108] sm:$0xff]  ;;  %v128_v3 = vadd.f32 %v127_v59, %v1182_v58  ;;  %v1196_v8 = vld [vmem:[#allocation2 + $0x110] sm:$0xff]  ;;  %v154_v43 = vmul.f32 %v1092_v6, %v1092_v6  ;;  %v153_v10 = vmul.f32 %v1090_v5, %v1090_v5 }
  0x1f   :  { %89 = vadd.xlane.f32.xlu1 %v88_v24  ;;  %v124_v7 = vadd.f32 %v123_v61, %v1186_v60  ;;  %v135_v9 = vsel %vm66_vm0, %v1190_v62, 0.0  ;;  %v1200_v12 = vld [vmem:[#allocation2 + $0x100] sm:$0xff]  ;;  %v131_v13 = vsel %vm66_vm0, %v1192_v63, 0.0  ;;  %v1204_v16 = vld [vmem:[#allocation2 + $0x138] sm:$0xff]  ;;  %v1206_v17 = vld [vmem:[#allocation2 + $0x128] sm:$0xff]  ;;  %v151_v2 = vmul.f32 %v1080_v0, %v1080_v0 }
  0x20   :  { %85 = vadd.xlane.f32.xlu0 %v84_v25  ;;  %v136_v19 = vadd.f32 %v135_v9, %v1196_v8  ;;  %v132_v21 = vadd.f32 %v131_v13, %v1200_v12  ;;  %v1210_v24 = vld [vmem:[#allocation2 + $0x130] sm:$0xff]  ;;  %v143_v25 = vsel %vm66_vm0, %v1204_v16, 0.0  ;;  %v1216_v29 = vld [vmem:[#allocation2 + $0x120] sm:$0xff]  ;;  %v199_v51 = vsel %vm66_vm0, %v154_v43, 0.0 }
  0x21   :  { %v144_v35 = vadd.f32 %v143_v25, %v1210_v24  ;;  %v158_v6 = vmul.f32 %v1106_v14, %v1106_v14  ;;  %v157_v5 = vmul.f32 %v1112_v18, %v1112_v18  ;;  %v155_v0 = vmul.f32 %v1116_v20, %v1116_v20 }
  0x22   :  { %v162_v14 = vmul.f32 %v1120_v22, %v1120_v22  ;;  %v161_v18 = vmul.f32 %v1126_v26, %v1126_v26  ;;  %v159_v20 = vmul.f32 %v1130_v28, %v1130_v28  ;;  %v166_v22 = vmul.f32 %v1134_v30, %v1134_v30 }
  0x23   :  { %97 = vadd.xlane.f32.xlu1 %v96_v32  ;;  %v139_v32 = vsel %vm66_vm0, %v1206_v17, 0.0  ;;  %v207_v59 = vsel %vm66_vm0, %v158_v6, 0.0  ;;  %v165_v26 = vmul.f32 %v1140_v34, %v1140_v34  ;;  %v163_v28 = vmul.f32 %v1144_v36, %v1144_v36 }
  0x24   :  { %93 = vadd.xlane.f32.xlu0 %v92_v33  ;;  %v148_v33 = vmul.f32 %v1088_v4, %v1088_v4  ;;  %v152_v4 = vmul.f32 %v1082_v1, %v1082_v1  ;;  %v156_v1 = vmul.f32 %v1108_v15, %v1108_v15  ;;  %v160_v15 = vmul.f32 %v1122_v23, %v1122_v23 }
  0x25   :  { %v215_v9 = vsel %vm66_vm0, %v162_v14, 0.0  ;;  %v164_v23 = vmul.f32 %v1136_v31, %v1136_v31  ;;  %v223_v25 = vsel %vm66_vm0, %v166_v22, 0.0  ;;  %v170_v30 = vmul.f32 %v1148_v38, %v1148_v38 }
  0x26   :  { %v187_v45 = vsel %vm66_vm0, %v148_v33, 0.0  ;;  %v195_v53 = vsel %vm66_vm0, %v152_v4, 0.0  ;;  %v203_v61 = vsel %vm66_vm0, %v156_v1, 0.0  ;;  %v211_v13 = vsel %vm66_vm0, %v160_v15, 0.0 }
  0x27   :  { %105 = vadd.xlane.f32.xlu1 %v104_v40  ;;  %v140_v40 = vadd.f32 %v139_v32, %v1216_v29  ;;  %v168_v31 = vmul.f32 %v1150_v39, %v1150_v39  ;;  %v224_v32 = vadd.f32 %v223_v25, %v165_v26  ;;  %v169_v34 = vmul.f32 %v1154_v42, %v1154_v42 }
  0x28   :  { %101 = vadd.xlane.f32.xlu0 %v100_v41  ;;  %v191_v41 = vsel %vm66_vm0, %v150_v27, 0.0  ;;  %v219_v27 = vsel %vm66_vm0, %v164_v23, 0.0  ;;  %v167_v36 = vmul.f32 %v1158_v44, %v1158_v44  ;;  %v174_v38 = vmul.f32 %v1162_v46, %v1162_v46 }
  0x29   :  { %v220_v33 = vadd.f32 %v219_v27, %v163_v28  ;;  %v172_v39 = vmul.f32 %v1164_v47, %v1164_v47  ;;  %v173_v42 = vmul.f32 %v1168_v50, %v1168_v50  ;;  %v171_v44 = vmul.f32 %v1172_v52, %v1172_v52 }
  0x2a   :  { %v178_v46 = vmul.f32 %v1176_v54, %v1176_v54  ;;  %v176_v47 = vmul.f32 %v1178_v55, %v1178_v55  ;;  %v177_v50 = vmul.f32 %v1182_v58, %v1182_v58  ;;  %v175_v52 = vmul.f32 %v1186_v60, %v1186_v60 }
  0x2b   :  { %113 = vadd.xlane.f32.xlu1 %v112_v48  ;;  %v192_v48 = vadd.f32 %v191_v41, %v149_v37  ;;  %v227_v37 = vsel %vm66_vm0, %v168_v31, 0.0  ;;  %v235_v43 = vsel %vm66_vm0, %v172_v39, 0.0  ;;  %v182_v54 = vmul.f32 %v1190_v62, %v1190_v62 }
  0x2c   :  { %109 = vadd.xlane.f32.xlu0 %v108_v49  ;;  %v188_v49 = vadd.f32 %v187_v45, %v147_v11  ;;  %v228_v41 = vadd.f32 %v227_v37, %v167_v36  ;;  %v239_v11 = vsel %vm66_vm0, %v174_v38, 0.0  ;;  %v236_v4 = vadd.f32 %v235_v43, %v171_v44 }
  0x2d   :  { %v240_v45 = vadd.f32 %v239_v11, %v173_v42  ;;  %v180_v55 = vmul.f32 %v1192_v63, %v1192_v63  ;;  %v181_v58 = vmul.f32 %v1196_v8, %v1196_v8  ;;  %v179_v60 = vmul.f32 %v1200_v12, %v1200_v12 }
  0x2e   :  { %v186_v62 = vmul.f32 %v1204_v16, %v1204_v16  ;;  %v184_v63 = vmul.f32 %v1206_v17, %v1206_v17  ;;  %v185_v8 = vmul.f32 %v1210_v24, %v1210_v24  ;;  %v183_v12 = vmul.f32 %v1216_v29, %v1216_v29 }
  0x2f   :  { %121 = vadd.xlane.f32.xlu1 %v120_v56  ;;  %v200_v56 = vadd.f32 %v199_v51, %v153_v10  ;;  %v243_v10 = vsel %vm66_vm0, %v176_v47, 0.0  ;;  %v251_v6 = vsel %vm66_vm0, %v180_v55, 0.0 }
  0x30   :  { %117 = vadd.xlane.f32.xlu0 %v116_v57  ;;  %v196_v57 = vadd.f32 %v195_v53, %v151_v2  ;;  %v244_v51 = vadd.f32 %v243_v10, %v175_v52  ;;  %v255_v2 = vsel %vm66_vm0, %v182_v54, 0.0  ;;  %v252_v1 = vadd.f32 %v251_v6, %v179_v60 }
  0x31   :  { %v256_v53 = vadd.f32 %v255_v2, %v181_v58 }
  0x33   :  { %129 = vadd.xlane.f32.xlu1 %v128_v3  ;;  %v208_v3 = vadd.f32 %v207_v59, %v157_v5  ;;  %v259_v5 = vsel %vm66_vm0, %v184_v63, 0.0  ;;  %v1046_v59 = vmov 0  }
  0x34   :  { %125 = vadd.xlane.f32.xlu0 %v124_v7  ;;  %v204_v7 = vadd.f32 %v203_v61, %v155_v0  ;;  %912 = vset.pattern.permute.xlu1 %v1046_v59 }
  0x35   :  { %911 = vset.pattern.permute.xlu0 %v1046_v59 }
  0x37   :  { %137 = vadd.xlane.f32.xlu1 %v136_v19  ;;  %v216_v19 = vadd.f32 %v215_v9, %v161_v18 }
  0x38   :  { %133 = vadd.xlane.f32.xlu0 %v132_v21  ;;  %v212_v21 = vadd.f32 %v211_v13, %v159_v20 }
  0x3b   :  { %145 = vadd.xlane.f32.xlu1 %v144_v35  ;;  %v231_v35 = vsel %vm66_vm0, %v170_v30, 0.0 }
  0x3c   :  { %141 = vadd.xlane.f32.xlu0 %v140_v40  ;;  %v232_v40 = vadd.f32 %v231_v35, %v169_v34 }
  0x3f   :  { %193 = vadd.xlane.f32.xlu1 %v192_v48  ;;  %v247_v48 = vsel %vm66_vm0, %v178_v46, 0.0 }
  0x40   :  { %189 = vadd.xlane.f32.xlu0 %v188_v49  ;;  %v248_v49 = vadd.f32 %v247_v48, %v177_v50 }
  0x43   :  { %201 = vadd.xlane.f32.xlu1 %v200_v56  ;;  %v263_v56 = vsel %vm66_vm0, %v186_v62, 0.0 }
  0x44   :  { %197 = vadd.xlane.f32.xlu0 %v196_v57  ;;  %v264_v16 = vadd.f32 %v263_v56, %v185_v8  ;;  %v260_v57 = vadd.f32 %v259_v5, %v183_v12 }
  0x47   :  { %209 = vadd.xlane.f32.xlu1 %v208_v3 }
  0x48   :  { %205 = vadd.xlane.f32.xlu0 %v204_v7 }
  0x4b   :  { %217 = vadd.xlane.f32.xlu1 %v216_v19 }
  0x4c   :  { %213 = vadd.xlane.f32.xlu0 %v212_v21 }
  0x4f   :  { %225 = vadd.xlane.f32.xlu1 %v224_v32 }
  0x50   :  { %221 = vadd.xlane.f32.xlu0 %v220_v33 }
  0x53   :  { %233 = vadd.xlane.f32.xlu1 %v232_v40 }
  0x54   :  { %229 = vadd.xlane.f32.xlu0 %v228_v41 }
  0x57   :  { %241 = vadd.xlane.f32.xlu1 %v240_v45 }
  0x58   :  { %237 = vadd.xlane.f32.xlu0 %v236_v4 }
  0x5b   :  { %249 = vadd.xlane.f32.xlu1 %v248_v49 }
  0x5c   :  { %245 = vadd.xlane.f32.xlu0 %v244_v51 }
  0x5f   :  { %257 = vadd.xlane.f32.xlu1 %v256_v53 }
  0x60   :  { %253 = vadd.xlane.f32.xlu0 %v252_v1 }
  0x63   :  { %265 = vadd.xlane.f32.xlu1 %v264_v16 }
  0x64   :  { %261 = vadd.xlane.f32.xlu0 %v260_v57 }
  0xa4   :  { %v78_v17 = vpop.xlane.xlu1 %77 }
  0xa5   :  { %v70_v24 = vpop.xlane.xlu0 %69  ;;  %v1348_v36 = vmul.f32 0.0051020407, %v78_v17 }
  0xa6   :  { %v1342_v27 = vmul.f32 0.0051020407, %v70_v24 }
  0xa7   :  { %v309_v45 = vmul.f32 %v1348_v36, %v1348_v36 }
  0xa8   :  { %v82_v0 = vpop.xlane.xlu1 %81  ;;  %v307_v38 = vmul.f32 %v1342_v27, %v1342_v27 }
  0xa9   :  { %v74_v14 = vpop.xlane.xlu0 %73  ;;  %v1344_v32 = vmul.f32 0.0051020407, %v82_v0 }
  0xaa   :  { %v1338_v28 = vmul.f32 0.0051020407, %v74_v14 }
  0xab   :  { %v310_v11 = vmul.f32 %v1344_v32, %v1344_v32 }
  0xac   :  { %v90_v61 = vpop.xlane.xlu1 %89  ;;  %v308_v34 = vmul.f32 %v1338_v28, %v1338_v28 }
  0xad   :  { %v86_v15 = vpop.xlane.xlu0 %85  ;;  %v1352_v40 = vmul.f32 0.0051020407, %v90_v61 }
  0xae   :  { %v1356_v44 = vmul.f32 0.0051020407, %v86_v15 }
  0xaf   :  { %v312_v54 = vmul.f32 %v1352_v40, %v1352_v40 }
  0xb0   :  { %v98_v3 = vpop.xlane.xlu1 %97  ;;  %v311_v51 = vmul.f32 %v1356_v44, %v1356_v44 }
  0xb1   :  { %v94_v18 = vpop.xlane.xlu0 %93  ;;  %v1362_v10 = vmul.f32 0.0051020407, %v98_v3 }
  0xb2   :  { %v1366_v6 = vmul.f32 0.0051020407, %v94_v18 }
  0xb3   :  { %v314_v56 = vmul.f32 %v1362_v10, %v1362_v10 }
  0xb4   :  { %v106_v29 = vpop.xlane.xlu1 %105  ;;  %v313_v14 = vmul.f32 %v1366_v6, %v1366_v6 }
  0xb5   :  { %v102_v7 = vpop.xlane.xlu0 %101  ;;  %v1370_v12 = vmul.f32 0.0051020407, %v106_v29 }
  0xb6   :  { %v1372_v59 = vmul.f32 0.0051020407, %v102_v7 }
  0xb7   :  { %v316_v29 = vmul.f32 %v1370_v12, %v1370_v12 }
  0xb8   :  { %v1320_v9 = vpop.xlane.xlu1 %113  ;;  %v315_v7 = vmul.f32 %v1372_v59, %v1372_v59 }
  0xb9   :  { %v1322_v20 = vpop.xlane.xlu0 %109 }
  0xbc   :  { %v1324_v22 = vpop.xlane.xlu1 %121 }
  0xbd   :  { %v1326_v13 = vpop.xlane.xlu0 %117 }
  0xc0   :  { %v1328_v23 = vpop.xlane.xlu1 %129 }
  0xc1   :  { %v1330_v19 = vpop.xlane.xlu0 %125 }
  0xc4   :  { %v1332_v26 = vpop.xlane.xlu1 %137 }
  0xc5   :  { %v1334_v21 = vpop.xlane.xlu0 %133 }
  0xc8   :  { %v1336_v25 = vpop.xlane.xlu1 %145 }
  0xc9   :  { %v1340_v30 = vpop.xlane.xlu0 %141 }
  0xcc   :  { %v194_v31 = vpop.xlane.xlu1 %193 }
  0xcd   :  { %v288_v33 = vmul.f32 0.0051020407, %v194_v31  ;;  %v190_v35 = vpop.xlane.xlu0 %189 }
  0xce   :  { %v287_v37 = vmul.f32 0.0051020407, %v190_v35 }
  0xcf   :  { %v328_v39 = vsub.f32 %v288_v33, %v308_v34 }
  0xd0   :  { %v327_v42 = vsub.f32 %v287_v37, %v307_v38  ;;  %v202_v41 = vpop.xlane.xlu1 %201 }
  0xd1   :  { %v348_v46 = vmax.f32 %v328_v39, 0.0  ;;  %v290_v43 = vmul.f32 0.0051020407, %v202_v41  ;;  %v198_v47 = vpop.xlane.xlu0 %197  ;;  %v1383_v39 = vld [vmem:[%s1758_s1 + $0x8] sm:$0xff] }
  0xd2   :  { %v347_v50 = vmax.f32 %v327_v42, 0.0  ;;  %v289_v4 = vmul.f32 0.0051020407, %v198_v47  ;;  %v1386_v42 = vmul.f32 0.0051020407, %v1322_v20 }
  0xd3   :  { %v388_v48 = vadd.f32 0.001, %v348_v46  ;;  %v330_v52 = vsub.f32 %v290_v43, %v310_v11  ;;  %v1391_v46 = vld [vmem:[%s1758_s1] sm:$0xff] }
  0xd4   :  { %v387_v55 = vadd.f32 0.001, %v347_v50  ;;  %v329_v49 = vsub.f32 %v289_v4, %v309_v45  ;;  %v210_v58 = vpop.xlane.xlu1 %209 }
  0xd5   :  { %915 = vrsqrt.f32 %v388_v48  ;;  %v350_v2 = vmax.f32 %v330_v52, 0.0  ;;  %v292_v60 = vmul.f32 0.0051020407, %v210_v58  ;;  %v206_v62 = vpop.xlane.xlu0 %205  ;;  %v317_v58 = vmul.f32 %v1386_v42, %v1386_v42 }
  0xd6   :  { %917 = vrsqrt.f32 %v387_v55  ;;  %v349_v63 = vmax.f32 %v329_v49, 0.0  ;;  %v291_v53 = vmul.f32 0.0051020407, %v206_v62  ;;  %v1402_v49 = vld [vmem:[%s1758_s1 + $0x18] sm:$0xff] }
  0xd7   :  { %v390_v8 = vadd.f32 0.001, %v350_v2  ;;  %v332_v1 = vsub.f32 %v292_v60, %v312_v54  ;;  %v1410_v60 = vld [vmem:[%s1758_s1 + $0x10] sm:$0xff] }
  0xd8   :  { %v389_v5 = vadd.f32 0.001, %v349_v63  ;;  %v331_v16 = vsub.f32 %v291_v53, %v311_v51  ;;  %v218_v57 = vpop.xlane.xlu1 %217 }
  0xd9   :  { %919 = vrsqrt.f32 %v390_v8  ;;  %v352_v17 = vmax.f32 %v332_v1, 0.0  ;;  %v294_v24 = vmul.f32 0.0051020407, %v218_v57  ;;  %v214_v0 = vpop.xlane.xlu0 %213 }
  0xda   :  { %921 = vrsqrt.f32 %v389_v5  ;;  %v351_v61 = vmax.f32 %v331_v16, 0.0  ;;  %v293_v15 = vmul.f32 0.0051020407, %v214_v0 }
  0xdb   :  { %v392_v3 = vadd.f32 0.001, %v352_v17  ;;  %v334_v18 = vsub.f32 %v294_v24, %v314_v56  ;;  %v1422_v17 = vld [vmem:[%s1758_s1 + $0x28] sm:$0xff]  ;;  %v1425_v24 = vmul.f32 0.0051020407, %v1326_v13 }
  0xdc   :  { %v391_v31 = vadd.f32 0.001, %v351_v61  ;;  %v333_v34 = vsub.f32 %v293_v15, %v313_v14  ;;  %v226_v33 = vpop.xlane.xlu1 %225  ;;  %v1430_v14 = vld [vmem:[%s1758_s1 + $0x20] sm:$0xff] }
  0xdd   :  { %923 = vrsqrt.f32 %v392_v3  ;;  %v354_v35 = vmax.f32 %v334_v18, 0.0  ;;  %v296_v38 = vmul.f32 0.0051020407, %v226_v33  ;;  %v222_v37 = vpop.xlane.xlu0 %221  ;;  %v319_v33 = vmul.f32 %v1425_v24, %v1425_v24 }
  0xde   :  { %925 = vrsqrt.f32 %v391_v31  ;;  %v353_v41 = vmax.f32 %v333_v34, 0.0  ;;  %v295_v11 = vmul.f32 0.0051020407, %v222_v37  ;;  %v1443_v34 = vld [vmem:[%s1758_s1 + $0x38] sm:$0xff] }
  0xdf   :  { %v916_v43 = vpop.eup %915  ;;  %v394_v47 = vadd.f32 0.001, %v354_v35  ;;  %v336_v45 = vsub.f32 %v296_v38, %v316_v29  ;;  %v1453_v35 = vld [vmem:[%s1758_s1 + $0x30] sm:$0xff] }
  0xe0   :  { %v918_v50 = vpop.eup %917  ;;  %v393_v4 = vadd.f32 0.001, %v353_v41  ;;  %v335_v48 = vsub.f32 %v295_v11, %v315_v7  ;;  %v1394_v52 = vmul.f32 %v916_v43, %v1383_v39  ;;  %v234_v5 = vpop.xlane.xlu1 %233  ;;  %v1448_v7 = vmul.f32 0.0051020407, %v1330_v19 }
  0xe1   :  { %927 = vrsqrt.f32 %v394_v47  ;;  %v356_v20 = vmax.f32 %v336_v45, 0.0  ;;  %v230_v54 = vpop.xlane.xlu0 %229  ;;  %v1397_v55 = vmul.f32 %v918_v50, %v1391_v46  ;;  %v1461_v19 = vmul.f32 0.0051020407, %v1320_v9 }
  0xe2   :  { %929 = vrsqrt.f32 %v393_v4  ;;  %v355_v51 = vmax.f32 %v335_v48, 0.0  ;;  %v297_v2 = vmul.f32 0.0051020407, %v230_v54  ;;  %574 = vperm.xlu1 %912, %v1394_v52   ;;  %v1467_v4 = vld [vmem:[%s1758_s1 + $0x48] sm:$0xff]  ;;  %v321_v48 = vmul.f32 %v1448_v7, %v1448_v7  ;;  %v1477_v54 = vld [vmem:[%s1758_s1 + $0x40] sm:$0xff] }
  0xe3   :  { %v920_v62 = vpop.eup %919  ;;  %v396_v63 = vadd.f32 0.001, %v356_v20  ;;  %569 = vperm.xlu0 %911, %v1397_v55   ;;  %v1472_v20 = vmul.f32 0.0051020407, %v1334_v21  ;;  %v318_v21 = vmul.f32 %v1461_v19, %v1461_v19 }
  0xe4   :  { %v922_v53 = vpop.eup %921  ;;  %v395_v8 = vadd.f32 0.001, %v355_v51  ;;  %v337_v1 = vsub.f32 %v297_v2, %v317_v58  ;;  %v1414_v56 = vmul.f32 %v920_v62, %v1402_v49  ;;  %v242_v37 = vpop.xlane.xlu1 %241  ;;  %v298_v58 = vmul.f32 0.0051020407, %v234_v5 }
  0xe5   :  { %931 = vrsqrt.f32 %v396_v63  ;;  %v238_v16 = vpop.xlane.xlu0 %237  ;;  %v1417_v57 = vmul.f32 %v922_v53, %v1410_v60 }
  0xe6   :  { %933 = vrsqrt.f32 %v395_v8  ;;  %v357_v0 = vmax.f32 %v337_v1, 0.0  ;;  %v299_v18 = vmul.f32 0.0051020407, %v238_v16  ;;  %v1486_v8 = vmul.f32 0.0051020407, %v1324_v22 }
  0xe7   :  { %v924_v61 = vpop.eup %923  ;;  %584 = vperm.xlu0 %911, %v1414_v56   ;;  %579 = vperm.xlu1 %912, %v1417_v57  }
  0xe8   :  { %v926_v15 = vpop.eup %925  ;;  %v397_v3 = vadd.f32 0.001, %v357_v0  ;;  %v1435_v29 = vmul.f32 %v924_v61, %v1422_v17  ;;  %v339_v11 = vsub.f32 %v299_v18, %v319_v33  ;;  %v250_v1 = vpop.xlane.xlu1 %249  ;;  %v323_v0 = vmul.f32 %v1472_v20, %v1472_v20 }
  0xe9   :  { %v246_v13 = vpop.xlane.xlu0 %245  ;;  %v1438_v31 = vmul.f32 %v926_v15, %v1430_v14  ;;  %v1492_v61 = vmul.f32 0.0051020407, %v1340_v30  ;;  %v1497_v15 = vld [vmem:[%s1758_s1 + $0x50] sm:$0xff]  ;;  %v300_v18 = vmul.f32 0.0051020407, %v242_v37 }
  0xea   :  { %935 = vrsqrt.f32 %v397_v3  ;;  %v301_v43 = vmul.f32 0.0051020407, %v246_v13  ;;  %v359_v2 = vmax.f32 %v339_v11, 0.0  ;;  %v338_v3 = vsub.f32 %v298_v58, %v318_v21 }
  0xeb   :  { %v928_v38 = vpop.eup %927  ;;  %594 = vperm.xlu0 %911, %v1435_v29   ;;  %589 = vperm.xlu1 %912, %v1438_v31   ;;  %v320_v11 = vmul.f32 %v1486_v8, %v1486_v8  ;;  %v1503_v30 = vmul.f32 0.0051020407, %v1328_v23  ;;  %v325_v37 = vmul.f32 %v1492_v61, %v1492_v61  ;;  %v302_v58 = vmul.f32 0.0051020407, %v250_v1 }
  0xec   :  { %v930_v41 = vpop.eup %929  ;;  %v1458_v47 = vmul.f32 %v928_v38, %v1443_v34  ;;  %v341_v62 = vsub.f32 %v301_v43, %v321_v48  ;;  %v399_v13 = vadd.f32 0.001, %v359_v2  ;;  %v447_v43 = vmul.f32 %v1397_v55, %v1342_v27 }
  0xed   :  { %v254_v45 = vpop.xlane.xlu0 %253  ;;  %v433_v50 = vmul.f32 %v930_v41, %v1453_v35  ;;  %v358_v48 = vmax.f32 %v338_v3, 0.0  ;;  %v322_v27 = vmul.f32 %v1503_v30, %v1503_v30  ;;  %v451_v55 = vmul.f32 %v1438_v31, %v1356_v44 }
  0xee   :  { %v303_v63 = vmul.f32 0.0051020407, %v254_v45  ;;  %v361_v33 = vmax.f32 %v341_v62, 0.0  ;;  %937 = vrsqrt.f32 %v399_v13  ;;  %v1518_v21 = vmul.f32 0.0051020407, %v1332_v26 }
  0xef   :  { %v932_v9 = vpop.eup %931  ;;  %604 = vperm.xlu0 %911, %v1458_v47   ;;  %599 = vperm.xlu1 %912, %v433_v50   ;;  %v398_v1 = vadd.f32 0.001, %v358_v48  ;;  %v453_v44 = vmul.f32 %v433_v50, %v1366_v6 }
  0xf0   :  { %v934_v51 = vpop.eup %933  ;;  %v1481_v53 = vmul.f32 %v932_v9, %v1467_v4  ;;  %v343_v38 = vsub.f32 %v303_v63, %v323_v0  ;;  %v340_v9 = vsub.f32 %v300_v18, %v320_v11  ;;  %v401_v2 = vadd.f32 0.001, %v361_v33  ;;  %v1540_v11 = vld [vmem:[%s1758_s1 + $0x60] sm:$0xff] }
  0xf1   :  { %v262_v16 = vpop.xlane.xlu0 %261  ;;  %v435_v5 = vmul.f32 %v934_v51, %v1477_v54  ;;  %v258_v51 = vpop.xlane.xlu1 %257  ;;  %v448_v63 = vmul.f32 %v1394_v52, %v1338_v28  ;;  %v342_v0 = vsub.f32 %v302_v58, %v322_v27  ;;  %v449_v28 = vmul.f32 %v1417_v57, %v1348_v36 }
  0xf2   :  { %v305_v41 = vmul.f32 0.0051020407, %v262_v16  ;;  %v363_v23 = vmax.f32 %v343_v38, 0.0  ;;  %v360_v16 = vmax.f32 %v340_v9, 0.0  ;;  %939 = vrsqrt.f32 %v401_v2  ;;  %v1551_v9 = vld [vmem:[%s1758_s1 + $0x70] sm:$0xff] }
  0xf3   :  { %614 = vperm.xlu0 %911, %v1481_v53   ;;  %609 = vperm.xlu1 %912, %v435_v5   ;;  %v304_v3 = vmul.f32 0.0051020407, %v258_v51  ;;  %v324_v26 = vmul.f32 %v1518_v21, %v1518_v21  ;;  %v1528_v52 = vmul.f32 0.0051020407, %v1336_v25  ;;  %941 = vrsqrt.f32 %v398_v1 }
  0xf4   :  { %v936_v22 = vpop.eup %935  ;;  %v345_v62 = vsub.f32 %v305_v41, %v325_v37  ;;  %v403_v18 = vadd.f32 0.001, %v363_v23  ;;  %v400_v31 = vadd.f32 0.001, %v360_v16  ;;  %v362_v33 = vmax.f32 %v342_v0, 0.0  ;;  %v1562_v23 = vld [vmem:[%s1758_s1 + $0x58] sm:$0xff] }
  0xf5   :  { %v437_v45 = vmul.f32 %v936_v22, %v1497_v15  ;;  %v266_v13 = vpop.xlane.xlu1 %265  ;;  %v344_v38 = vsub.f32 %v304_v3, %v324_v26  ;;  %v455_v50 = vmul.f32 %v435_v5, %v1372_v59  ;;  %v450_v36 = vmul.f32 %v1414_v56, %v1344_v32  ;;  %v1579_v16 = vld [vmem:[%s1758_s1 + $0x68] sm:$0xff]  ;;  %v1584_v0 = vld [vmem:[%s1758_s1 + $0x90] sm:$0xff] }
  0xf6   :  { %v365_v22 = vmax.f32 %v345_v62, 0.0  ;;  %943 = vrsqrt.f32 %v403_v18  ;;  %v306_v41 = vmul.f32 0.0051020407, %v266_v13  ;;  %v326_v25 = vmul.f32 %v1528_v52, %v1528_v52  ;;  %v1567_v62 = vld [vmem:[%s1758_s1 + $0x80] sm:$0xff] }
  0xf7   :  { %487 = vrot.lane.b32.xlu0 %v447_v43, %s1047_s16  ;;  %619 = vperm.xlu1 %912, %v437_v45   ;;  %945 = vrsqrt.f32 %v400_v31  ;;  %v402_v43 = vadd.f32 0.001, %v362_v33  ;;  %v364_v37 = vmax.f32 %v344_v38, 0.0  ;;  %v452_v32 = vmul.f32 %v1435_v29, %v1352_v40 }
  0xf8   :  { %v405_v6 = vadd.f32 0.001, %v365_v22  ;;  %v938_v57 = vpop.eup %937  ;;  %v346_v59 = vsub.f32 %v306_v41, %v326_v25  ;;  %v457_v56 = vmul.f32 %v437_v45, %v1386_v42  ;;  %v454_v40 = vmul.f32 %v1458_v47, %v1362_v10  ;;  %v1595_v22 = vld [vmem:[%s1758_s1 + $0x78] sm:$0xff] }
  0xf9   :  { %v439_v5 = vmul.f32 %v938_v57, %v1540_v11  ;;  %v404_v58 = vadd.f32 0.001, %v364_v37  ;;  %v456_v47 = vmul.f32 %v1481_v53, %v1370_v12  ;;  %v1048_v41 = vmov 1  }
  0xfa   :  { %947 = vrsqrt.f32 %v405_v6  ;;  %v366_v51 = vmax.f32 %v346_v59, 0.0 }
  0xfb   :  { %495 = vrot.lane.b32.xlu0 %v451_v55, %s1047_s16  ;;  %489 = vrot.lane.b32.xlu1 %v448_v63, %s1047_s16  ;;  %949 = vrsqrt.f32 %v402_v43  ;;  %v459_v42 = vmul.f32 %v439_v5, %v1425_v24 }
  0xfc   :  { %v940_v48 = vpop.eup %939  ;;  %951 = vrsqrt.f32 %v404_v58  ;;  %v406_v10 = vadd.f32 0.001, %v366_v51 }
  0xfd   :  { %v942_v2 = vpop.eup %941  ;;  %v441_v29 = vmul.f32 %v940_v48, %v1551_v9 }
  0xfe   :  { %v438_v55 = vmul.f32 %v942_v2, %v1562_v23  ;;  %953 = vrsqrt.f32 %v406_v10 }
  0xff   :  { %499 = vrot.lane.b32.xlu0 %v453_v44, %s1047_s16  ;;  %491 = vrot.lane.b32.xlu1 %v449_v28, %s1047_s16  ;;  %v461_v27 = vmul.f32 %v441_v29, %v1448_v7  ;;  %v1605_v28 = vld [vmem:[%s1758_s1 + $0x88] sm:$0xff] }
 0x100   :  { %v944_v45 = vpop.eup %943  ;;  %v458_v12 = vmul.f32 %v438_v55, %v1461_v19 }
 0x101   :  { %v946_v24 = vpop.eup %945  ;;  %v443_v63 = vmul.f32 %v944_v45, %v1567_v62 }
 0x102   :  { %v440_v53 = vmul.f32 %v946_v24, %v1579_v16 }
 0x103   :  { %503 = vrot.lane.b32.xlu0 %v455_v50, %s1047_s16  ;;  %493 = vrot.lane.b32.xlu1 %v450_v36, %s1047_s16  ;;  %v463_v7 = vmul.f32 %v443_v63, %v1472_v20 }
 0x104   :  { %v948_v1 = vpop.eup %947  ;;  %v460_v13 = vmul.f32 %v440_v53, %v1486_v8  ;;  %v1614_v8 = vld [vmem:[%s1758_s1 + $0x98] sm:$0xff]  ;;  %s1049_s1 = smov [#allocation5]  }
 0x105   :  { %v445_v3 = vmul.f32 %v948_v1, %v1584_v0  ;;  %v950_v18 = vpop.eup %949  ;;  %s892_s8 = sshll.u32 %s1049_s1, 4  ;;  %s893_s8 = int_to_ptr.vmem [resolvable:$true] %s892_s8 }
 0x106   :  { %v442_v20 = vmul.f32 %v950_v18, %v1595_v22  ;;  %v952_v44 = vpop.eup %951  ;;  %s1017_s9 = scalar_lea.vmem %s893_s8, 5120  ;;  %p1022_p9 = scmp.lt.s32.totalorder %s893_s8, %s893_s8 }
 0x107   :  { %497 = vrot.lane.b32.xlu1 %v452_v32, %s1047_s16  ;;  %507 = vrot.lane.b32.xlu0 %v457_v56, %s1047_s16  ;;  %v465_v19 = vmul.f32 %v445_v3, %v1492_v61  ;;  %v444_v31 = vmul.f32 %v952_v44, %v1605_v28  ;;  %p1018_p8 = scmp.ne.s32.totalorder %s893_s8, %s1017_s9  ;;  %p1023_p10 = scmp.lt.s32.totalorder %s1017_s9, %s1017_s9 }
 0x108   :  { %v462_v26 = vmul.f32 %v442_v20, %v1503_v30  ;;  %v954_v33 = vpop.eup %953 }
 0x109   :  { %v464_v61 = vmul.f32 %v444_v31, %v1518_v21  ;;  %v446_v38 = vmul.f32 %v954_v33, %v1614_v8  ;;  %p1024_p11 = por %p1023_p10, %p1022_p9 }
 0x10b   :  { %501 = vrot.lane.b32.xlu1 %v454_v40, %s1047_s16  ;;  %511 = vrot.lane.b32.xlu0 %v459_v42, %s1047_s16  ;;  %v466_v30 = vmul.f32 %v446_v38, %v1528_v52  ;;  %p1025_p12 = pnand %p1024_p11, %p1018_p8 }
 0x10f   :  { %505 = vrot.lane.b32.xlu1 %v456_v47, %s1047_s16  ;;  %515 = vrot.lane.b32.xlu0 %v461_v27, %s1047_s16 }
 0x113   :  { %509 = vrot.lane.b32.xlu1 %v458_v12, %s1047_s16  ;;  %519 = vrot.lane.b32.xlu0 %v463_v7, %s1047_s16 }
 0x117   :  { %513 = vrot.lane.b32.xlu1 %v460_v13, %s1047_s16  ;;  %523 = vrot.lane.b32.xlu0 %v465_v19, %s1047_s16 }
 0x11b   :  { %517 = vrot.lane.b32.xlu1 %v462_v26, %s1047_s16  ;;  %624 = vperm.xlu0 %911, %v438_v55  }
 0x11f   :  { %521 = vrot.lane.b32.xlu1 %v464_v61, %s1047_s16  ;;  %634 = vperm.xlu0 %911, %v440_v53   ;;  %v955_v61 = vld [vmem:[#allocation2] sm:$0xff] }
 0x123   :  { %525 = vrot.lane.b32.xlu1 %v466_v30, %s1047_s16  ;;  %644 = vperm.xlu0 %911, %v442_v20  }
 0x127   :  { %629 = vperm.xlu1 %912, %v439_v5   ;;  %654 = vperm.xlu0 %911, %v444_v31  }
 0x12b   :  { %639 = vperm.xlu1 %912, %v441_v29   ;;  %664 = vperm.xlu0 %911, %v446_v38   ;;  %v956_v38 = vld [vmem:[#allocation2 + $0x8] sm:$0xff] }
 0x12f   :  { %649 = vperm.xlu1 %912, %v443_v63   ;;  %914 = vset.pattern.permute.xlu0 %v1048_v41 }
 0x133   :  { %659 = vperm.xlu1 %912, %v445_v3  }
 0x137   :  { %913 = vset.pattern.permute.xlu1 %v1048_v41 }
 0x161   :  { %v1622_v21 = vpop.permute.xlu1 %574 }
 0x162   :  { %v1624_v6 = vpop.permute.xlu0 %569 }
 0x163   :  { %v668_v30 = vmul.f32 %v956_v38, %v1624_v6 }
 0x166   :  { %v1626_v50 = vpop.permute.xlu1 %579  ;;  %v1628_v36 = vpop.permute.xlu0 %584 }
 0x16a   :  { %v1630_v52 = vpop.permute.xlu1 %589  ;;  %v1632_v57 = vpop.permute.xlu0 %594 }
 0x16e   :  { %v1634_v25 = vpop.permute.xlu1 %599  ;;  %v1636_v43 = vpop.permute.xlu0 %604 }
 0x172   :  { %v1638_v37 = vpop.permute.xlu1 %609  ;;  %v1640_v59 = vpop.permute.xlu0 %614 }
 0x176   :  { %v1642_v32 = vpop.permute.xlu1 %619  ;;  %v488_v56 = vpop.permute.xlu0 %487 }
 0x177   :  { %v547_v5 = vsub.f32 %v1391_v46, %v488_v56 }
 0x179   :  { %709 = vperm.xlu1 %913, %v547_v5  }
 0x17a   :  { %v490_v48 = vpop.permute.xlu1 %489  ;;  %v496_v58 = vpop.permute.xlu0 %495 }
 0x17b   :  { %v548_v51 = vsub.f32 %v1383_v39, %v490_v48  ;;  %v551_v42 = vsub.f32 %v1430_v14, %v496_v58  ;;  %v957_v58 = vld [vmem:[#allocation2 + $0x10] sm:$0xff] }
 0x17d   :  { %714 = vperm.xlu0 %914, %v548_v51   ;;  %v669_v51 = vmul.f32 %v957_v58, %v1622_v21  ;;  %v972_v58 = vld [vmem:[#allocation2 + $0x78] sm:$0xff] }
 0x17e   :  { %v492_v2 = vpop.permute.xlu1 %491  ;;  %v500_v40 = vpop.permute.xlu0 %499 }
 0x17f   :  { %v549_v29 = vsub.f32 %v1410_v60, %v492_v2  ;;  %v553_v24 = vsub.f32 %v1453_v35, %v500_v40  ;;  %v958_v2 = vld [vmem:[#allocation2 + $0x18] sm:$0xff] }
 0x180   :  { %v670_v40 = vmul.f32 %v958_v2, %v1622_v21  ;;  %v973_v2 = vld [vmem:[#allocation2 + $0xa0] sm:$0xff] }
 0x181   :  { %719 = vperm.xlu1 %913, %v549_v29   ;;  %729 = vperm.xlu0 %914, %v551_v42  }
 0x182   :  { %v494_v45 = vpop.permute.xlu1 %493  ;;  %v504_v10 = vpop.permute.xlu0 %503 }
 0x183   :  { %v550_v46 = vsub.f32 %v1402_v49, %v494_v45  ;;  %v555_v39 = vsub.f32 %v1477_v54, %v504_v10  ;;  %v959_v10 = vld [vmem:[#allocation2 + $0x20] sm:$0xff] }
 0x185   :  { %724 = vperm.xlu1 %913, %v550_v46   ;;  %739 = vperm.xlu0 %914, %v553_v24   ;;  %v960_v24 = vld [vmem:[#allocation2 + $0x28] sm:$0xff] }
 0x186   :  { %v498_v47 = vpop.permute.xlu1 %497  ;;  %v508_v27 = vpop.permute.xlu0 %507  ;;  %v672_v46 = vmul.f32 %v960_v24, %v1626_v50 }
 0x187   :  { %v552_v55 = vsub.f32 %v1422_v17, %v498_v47  ;;  %v557_v63 = vsub.f32 %v1497_v15, %v508_v27  ;;  %v961_v47 = vld [vmem:[#allocation2 + $0x40] sm:$0xff] }
 0x188   :  { %v675_v27 = vmul.f32 %v961_v47, %v1630_v52  ;;  %v975_v47 = vld [vmem:[#allocation2 + $0x90] sm:$0xff] }
 0x189   :  { %734 = vperm.xlu1 %913, %v552_v55   ;;  %749 = vperm.xlu0 %914, %v555_v39   ;;  %v962_v39 = vld [vmem:[#allocation2 + $0x48] sm:$0xff] }
 0x18a   :  { %v502_v14 = vpop.permute.xlu1 %501  ;;  %v512_v60 = vpop.permute.xlu0 %511  ;;  %v676_v55 = vmul.f32 %v962_v39, %v1630_v52 }
 0x18b   :  { %v554_v1 = vsub.f32 %v1443_v34, %v502_v14  ;;  %v559_v12 = vsub.f32 %v1540_v11, %v512_v60 }
 0x18d   :  { %744 = vperm.xlu1 %913, %v554_v1   ;;  %759 = vperm.xlu0 %914, %v557_v63  }
 0x18e   :  { %v506_v35 = vpop.permute.xlu1 %505  ;;  %v516_v49 = vpop.permute.xlu0 %515 }
 0x18f   :  { %v556_v7 = vsub.f32 %v1467_v4, %v506_v35  ;;  %v561_v53 = vsub.f32 %v1551_v9, %v516_v49  ;;  %v963_v49 = vld [vmem:[#allocation2 + $0x30] sm:$0xff] }
 0x191   :  { %754 = vperm.xlu1 %913, %v556_v7   ;;  %769 = vperm.xlu0 %914, %v559_v12   ;;  %v673_v12 = vmul.f32 %v963_v49, %v1628_v36  ;;  %v964_v7 = vld [vmem:[#allocation2 + $0x38] sm:$0xff] }
 0x192   :  { %v510_v54 = vpop.permute.xlu1 %509  ;;  %v520_v17 = vpop.permute.xlu0 %519 }
 0x193   :  { %v558_v3 = vsub.f32 %v1562_v23, %v510_v54  ;;  %v563_v34 = vsub.f32 %v1567_v62, %v520_v17  ;;  %v965_v54 = vld [vmem:[#allocation2 + $0x60] sm:$0xff] }
 0x194   :  { %v679_v17 = vmul.f32 %v965_v54, %v1634_v25 }
 0x195   :  { %764 = vperm.xlu1 %913, %v558_v3   ;;  %779 = vperm.xlu0 %914, %v561_v53   ;;  %v966_v53 = vld [vmem:[#allocation2 + $0x68] sm:$0xff] }
 0x196   :  { %v514_v15 = vpop.permute.xlu1 %513  ;;  %v524_v13 = vpop.permute.xlu0 %523  ;;  %v680_v52 = vmul.f32 %v966_v53, %v1634_v25  ;;  %v982_v53 = vld [vmem:[#allocation2 + $0xe8] sm:$0xff] }
 0x197   :  { %v560_v18 = vsub.f32 %v1579_v16, %v514_v15  ;;  %v565_v4 = vsub.f32 %v1584_v0, %v524_v13 }
 0x199   :  { %774 = vperm.xlu1 %913, %v560_v18   ;;  %789 = vperm.xlu0 %914, %v563_v34  }
 0x19a   :  { %v518_v11 = vpop.permute.xlu1 %517  ;;  %v1664_v62 = vpop.permute.xlu0 %624 }
 0x19b   :  { %v562_v19 = vsub.f32 %v1595_v22, %v518_v11 }
 0x19d   :  { %784 = vperm.xlu1 %913, %v562_v19   ;;  %799 = vperm.xlu0 %914, %v565_v4   ;;  %v967_v4 = vld [vmem:[#allocation2 + $0x50] sm:$0xff]  ;;  %v968_v19 = vld [vmem:[#allocation2 + $0x58] sm:$0xff] }
 0x19e   :  { %v522_v9 = vpop.permute.xlu1 %521  ;;  %v1668_v26 = vpop.permute.xlu0 %634 }
 0x19f   :  { %v564_v23 = vsub.f32 %v1605_v28, %v522_v9  ;;  %v678_v9 = vmul.f32 %v968_v19, %v1632_v57 }
 0x1a1   :  { %794 = vperm.xlu1 %913, %v564_v23   ;;  %v969_v23 = vld [vmem:[#allocation2 + $0x80] sm:$0xff] }
 0x1a2   :  { %v526_v20 = vpop.permute.xlu1 %525  ;;  %v1672_v0 = vpop.permute.xlu0 %644  ;;  %v683_v25 = vmul.f32 %v969_v23, %v1638_v37  ;;  %v986_v23 = vld [vmem:[#allocation2 + $0x108] sm:$0xff] }
 0x1a3   :  { %v566_v44 = vsub.f32 %v1614_v8, %v526_v20  ;;  %v667_v8 = vmul.f32 %v955_v61, %v1624_v6  ;;  %v671_v6 = vmul.f32 %v959_v10, %v1626_v50  ;;  %v674_v50 = vmul.f32 %v964_v7, %v1628_v36  ;;  %v970_v20 = vld [vmem:[#allocation2 + $0x88] sm:$0xff]  ;;  %v979_v7 = vld [vmem:[#allocation2 + $0xb0] sm:$0xff] }
 0x1a4   :  { %v677_v36 = vmul.f32 %v967_v4, %v1632_v57  ;;  %v983_v4 = vld [vmem:[#allocation2 + $0xd0] sm:$0xff] }
 0x1a5   :  { %804 = vperm.xlu1 %913, %v566_v44   ;;  %v684_v44 = vmul.f32 %v970_v20, %v1638_v37  ;;  %v687_v37 = vmul.f32 %v973_v2, %v1642_v32 }
 0x1a6   :  { %v1666_v16 = vpop.permute.xlu1 %629  ;;  %v1676_v33 = vpop.permute.xlu0 %654 }
 0x1aa   :  { %v1670_v31 = vpop.permute.xlu1 %639  ;;  %v1682_v41 = vpop.permute.xlu0 %664 }
 0x1ae   :  { %v1674_v22 = vpop.permute.xlu1 %649 }
 0x1b2   :  { %v1678_v28 = vpop.permute.xlu1 %659 }
 0x1f8   :  { %v710_v56 = vpop.permute.xlu1 %709 }
 0x1f9   :  { %v807_v5 = vadd.f32 %v710_v56, %v667_v8  ;;  %v808_v48 = vadd.f32 %v710_v56, %v668_v30 }
 0x1fb   :  { %847 = vst [vmem:[#allocation5] sm:$0xff] %v807_v5  ;;  %848 = vst.msk [vmem:[#allocation5 + $0x8] sm:$0xff] %vm66_vm0, %v808_v48  ;;  %v971_v48 = vld [vmem:[#allocation2 + $0x70] sm:$0xff] }
 0x1fc   :  { %v715_v42 = vpop.permute.xlu0 %714  ;;  %v681_v57 = vmul.f32 %v971_v48, %v1636_v43 }
 0x1fd   :  { %v809_v29 = vadd.f32 %v715_v42, %v669_v51  ;;  %v810_v45 = vadd.f32 %v715_v42, %v670_v40  ;;  %v682_v51 = vmul.f32 %v972_v58, %v1636_v43  ;;  %v974_v40 = vld [vmem:[#allocation2 + $0xa8] sm:$0xff]  ;;  %v685_v43 = vmul.f32 %v975_v47, %v1640_v59 }
 0x1fe   :  { %v688_v42 = vmul.f32 %v974_v40, %v1642_v32  ;;  %v990_v58 = vld [vmem:[#allocation2 + $0x128] sm:$0xff] }
 0x1ff   :  { %849 = vst [vmem:[#allocation5 + $0x10] sm:$0xff] %v809_v29  ;;  %850 = vst.msk [vmem:[#allocation5 + $0x18] sm:$0xff] %vm66_vm0, %v810_v45 }
 0x200   :  { %v720_v21 = vpop.permute.xlu1 %719  ;;  %v730_v14 = vpop.permute.xlu0 %729 }
 0x201   :  { %v811_v60 = vadd.f32 %v720_v21, %v671_v6  ;;  %v812_v63 = vadd.f32 %v720_v21, %v672_v46  ;;  %v815_v1 = vadd.f32 %v730_v14, %v675_v27  ;;  %v816_v35 = vadd.f32 %v730_v14, %v676_v55  ;;  %v976_v27 = vld [vmem:[#allocation2 + $0x98] sm:$0xff]  ;;  %v977_v55 = vld [vmem:[#allocation2 + $0xc0] sm:$0xff]  ;;  %v978_v21 = vld [vmem:[#allocation2 + $0xc8] sm:$0xff] }
 0x202   :  { %v686_v39 = vmul.f32 %v976_v27, %v1640_v59  ;;  %v691_v32 = vmul.f32 %v977_v55, %v1666_v16  ;;  %v692_v14 = vmul.f32 %v978_v21, %v1666_v16  ;;  %v689_v59 = vmul.f32 %v979_v7, %v1664_v62 }
 0x203   :  { %851 = vst [vmem:[#allocation5 + $0x20] sm:$0xff] %v811_v60  ;;  %852 = vst.msk [vmem:[#allocation5 + $0x28] sm:$0xff] %vm66_vm0, %v812_v63 }
 0x204   :  { %855 = vst [vmem:[#allocation5 + $0x40] sm:$0xff] %v815_v1  ;;  %856 = vst.msk [vmem:[#allocation5 + $0x48] sm:$0xff] %vm66_vm0, %v816_v35  ;;  %v725_v3 = vpop.permute.xlu1 %724  ;;  %v740_v15 = vpop.permute.xlu0 %739 }
 0x205   :  { %v813_v34 = vadd.f32 %v725_v3, %v673_v12  ;;  %v814_v18 = vadd.f32 %v725_v3, %v674_v50  ;;  %v819_v13 = vadd.f32 %v740_v15, %v679_v17  ;;  %v820_v11 = vadd.f32 %v740_v15, %v680_v52  ;;  %v980_v50 = vld [vmem:[#allocation2 + $0xb8] sm:$0xff]  ;;  %v981_v17 = vld [vmem:[#allocation2 + $0xe0] sm:$0xff] }
 0x206   :  { %v690_v54 = vmul.f32 %v980_v50, %v1664_v62  ;;  %v695_v16 = vmul.f32 %v981_v17, %v1670_v31  ;;  %v696_v52 = vmul.f32 %v982_v53, %v1670_v31  ;;  %v693_v62 = vmul.f32 %v983_v4, %v1668_v26 }
 0x207   :  { %853 = vst [vmem:[#allocation5 + $0x30] sm:$0xff] %v813_v34  ;;  %854 = vst.msk [vmem:[#allocation5 + $0x38] sm:$0xff] %vm66_vm0, %v814_v18 }
 0x208   :  { %859 = vst [vmem:[#allocation5 + $0x60] sm:$0xff] %v819_v13  ;;  %860 = vst.msk [vmem:[#allocation5 + $0x68] sm:$0xff] %vm66_vm0, %v820_v11  ;;  %v735_v61 = vpop.permute.xlu1 %734  ;;  %v750_v8 = vpop.permute.xlu0 %749 }
 0x209   :  { %v817_v38 = vadd.f32 %v735_v61, %v677_v36  ;;  %v818_v30 = vadd.f32 %v735_v61, %v678_v9  ;;  %v823_v56 = vadd.f32 %v750_v8, %v683_v25  ;;  %v824_v5 = vadd.f32 %v750_v8, %v684_v44  ;;  %v984_v36 = vld [vmem:[#allocation2 + $0xd8] sm:$0xff]  ;;  %v985_v9 = vld [vmem:[#allocation2 + $0x100] sm:$0xff] }
 0x20a   :  { %v694_v19 = vmul.f32 %v984_v36, %v1668_v26  ;;  %v699_v31 = vmul.f32 %v985_v9, %v1674_v22  ;;  %v700_v25 = vmul.f32 %v986_v23, %v1674_v22 }
 0x20b   :  { %857 = vst [vmem:[#allocation5 + $0x50] sm:$0xff] %v817_v38  ;;  %858 = vst.msk [vmem:[#allocation5 + $0x58] sm:$0xff] %vm66_vm0, %v818_v30 }
 0x20c   :  { %863 = vst [vmem:[#allocation5 + $0x80] sm:$0xff] %v823_v56  ;;  %864 = vst.msk [vmem:[#allocation5 + $0x88] sm:$0xff] %vm66_vm0, %v824_v5  ;;  %v745_v29 = vpop.permute.xlu1 %744  ;;  %v760_v45 = vpop.permute.xlu0 %759  ;;  %v987_v56 = vld [vmem:[#allocation2 + $0xf0] sm:$0xff]  ;;  %v988_v5 = vld [vmem:[#allocation2 + $0xf8] sm:$0xff] }
 0x20d   :  { %v821_v10 = vadd.f32 %v745_v29, %v681_v57  ;;  %v822_v6 = vadd.f32 %v745_v29, %v682_v51  ;;  %v827_v24 = vadd.f32 %v760_v45, %v687_v37  ;;  %v828_v46 = vadd.f32 %v760_v45, %v688_v42  ;;  %v989_v57 = vld [vmem:[#allocation2 + $0x120] sm:$0xff] }
 0x20e   :  { %v697_v26 = vmul.f32 %v987_v56, %v1672_v0  ;;  %v698_v48 = vmul.f32 %v988_v5, %v1672_v0  ;;  %v703_v22 = vmul.f32 %v989_v57, %v1678_v28  ;;  %v704_v51 = vmul.f32 %v990_v58, %v1678_v28 }
 0x20f   :  { %861 = vst [vmem:[#allocation5 + $0x70] sm:$0xff] %v821_v10  ;;  %862 = vst.msk [vmem:[#allocation5 + $0x78] sm:$0xff] %vm66_vm0, %v822_v6  ;;  %v991_v10 = vld [vmem:[#allocation2 + $0x110] sm:$0xff]  ;;  %v992_v6 = vld [vmem:[#allocation2 + $0x118] sm:$0xff] }
 0x210   :  { %867 = vst [vmem:[#allocation5 + $0xa0] sm:$0xff] %v827_v24  ;;  %868 = vst.msk [vmem:[#allocation5 + $0xa8] sm:$0xff] %vm66_vm0, %v828_v46  ;;  %v755_v60 = vpop.permute.xlu1 %754  ;;  %v770_v63 = vpop.permute.xlu0 %769  ;;  %v701_v0 = vmul.f32 %v991_v10, %v1676_v33  ;;  %v702_v24 = vmul.f32 %v992_v6, %v1676_v33 }
 0x211   :  { %v825_v1 = vadd.f32 %v755_v60, %v685_v43  ;;  %v826_v35 = vadd.f32 %v755_v60, %v686_v39  ;;  %v831_v49 = vadd.f32 %v770_v63, %v691_v32  ;;  %v832_v12 = vadd.f32 %v770_v63, %v692_v14  ;;  %v993_v43 = vld [vmem:[#allocation2 + $0x130] sm:$0xff]  ;;  %v994_v39 = vld [vmem:[#allocation2 + $0x138] sm:$0xff] }
 0x212   :  { %v705_v27 = vmul.f32 %v993_v43, %v1682_v41  ;;  %v706_v55 = vmul.f32 %v994_v39, %v1682_v41 }
 0x213   :  { %865 = vst [vmem:[#allocation5 + $0x90] sm:$0xff] %v825_v1  ;;  %866 = vst.msk [vmem:[#allocation5 + $0x98] sm:$0xff] %vm66_vm0, %v826_v35 }
 0x214   :  { %871 = vst [vmem:[#allocation5 + $0xc0] sm:$0xff] %v831_v49  ;;  %872 = vst.msk [vmem:[#allocation5 + $0xc8] sm:$0xff] %vm66_vm0, %v832_v12  ;;  %v765_v3 = vpop.permute.xlu1 %764  ;;  %v780_v15 = vpop.permute.xlu0 %779 }
 0x215   :  { %v829_v34 = vadd.f32 %v765_v3, %v689_v59  ;;  %v830_v18 = vadd.f32 %v765_v3, %v690_v54  ;;  %v835_v13 = vadd.f32 %v780_v15, %v695_v16  ;;  %v836_v11 = vadd.f32 %v780_v15, %v696_v52 }
 0x217   :  { %869 = vst [vmem:[#allocation5 + $0xb0] sm:$0xff] %v829_v34  ;;  %870 = vst.msk [vmem:[#allocation5 + $0xb8] sm:$0xff] %vm66_vm0, %v830_v18 }
 0x218   :  { %875 = vst [vmem:[#allocation5 + $0xe0] sm:$0xff] %v835_v13  ;;  %876 = vst.msk [vmem:[#allocation5 + $0xe8] sm:$0xff] %vm66_vm0, %v836_v11  ;;  %v775_v20 = vpop.permute.xlu1 %774  ;;  %v790_v44 = vpop.permute.xlu0 %789 }
 0x219   :  { %v833_v61 = vadd.f32 %v775_v20, %v693_v62  ;;  %v834_v8 = vadd.f32 %v775_v20, %v694_v19  ;;  %v839_v38 = vadd.f32 %v790_v44, %v699_v31  ;;  %v840_v30 = vadd.f32 %v790_v44, %v700_v25 }
 0x21b   :  { %873 = vst [vmem:[#allocation5 + $0xd0] sm:$0xff] %v833_v61  ;;  %874 = vst.msk [vmem:[#allocation5 + $0xd8] sm:$0xff] %vm66_vm0, %v834_v8 }
 0x21c   :  { %879 = vst [vmem:[#allocation5 + $0x100] sm:$0xff] %v839_v38  ;;  %880 = vst.msk [vmem:[#allocation5 + $0x108] sm:$0xff] %vm66_vm0, %v840_v30  ;;  %v785_v2 = vpop.permute.xlu1 %784  ;;  %v800_v37 = vpop.permute.xlu0 %799 }
 0x21d   :  { %v837_v40 = vadd.f32 %v785_v2, %v697_v26  ;;  %v838_v42 = vadd.f32 %v785_v2, %v698_v48  ;;  %v843_v29 = vadd.f32 %v800_v37, %v703_v22  ;;  %v844_v45 = vadd.f32 %v800_v37, %v704_v51 }
 0x21f   :  { %877 = vst [vmem:[#allocation5 + $0xf0] sm:$0xff] %v837_v40  ;;  %878 = vst.msk [vmem:[#allocation5 + $0xf8] sm:$0xff] %vm66_vm0, %v838_v42 }
 0x220   :  { %883 = vst [vmem:[#allocation5 + $0x120] sm:$0xff] %v843_v29  ;;  %884 = vst.msk [vmem:[#allocation5 + $0x128] sm:$0xff] %vm66_vm0, %v844_v45  ;;  %v795_v28 = vpop.permute.xlu1 %794 }
 0x221   :  { %v841_v46 = vadd.f32 %v795_v28, %v701_v0  ;;  %v842_v47 = vadd.f32 %v795_v28, %v702_v24 }
 0x223   :  { %881 = vst [vmem:[#allocation5 + $0x110] sm:$0xff] %v841_v46  ;;  %882 = vst.msk [vmem:[#allocation5 + $0x118] sm:$0xff] %vm66_vm0, %v842_v47 }
 0x224   :  { %v805_v33 = vpop.permute.xlu1 %804 }
 0x225   :  { %v845_v32 = vadd.f32 %v805_v33, %v705_v27  ;;  %v846_v21 = vadd.f32 %v805_v33, %v706_v55 }
 0x227   :  { %885 = vst [vmem:[#allocation5 + $0x130] sm:$0xff] %v845_v32  ;;  %886 = vst.msk [vmem:[#allocation5 + $0x138] sm:$0xff] %vm66_vm0, %v846_v21 }
 0x228   :  { %1028 = shalt.err (!%p1025_p12)
}
 0x229   :  { %s1029_s12 = scalar_lea.hbm %s1759_s2, 5120 }
 0x22a   :  { %p1030_p13 = scmp.ne.s32.totalorder %s1759_s2, %s1029_s12  ;;  %p1033_p0 = scmp.lt.u32.totalorder %s1029_s12, %s1759_s2 }
 0x22c   :  { %p1035_p1 = pnand %p1033_p0, %p1030_p13 }
 0x22e   :  { %1038 = shalt.err (!%p1035_p1)
}
 0x22f   :  { %898 = dma.vmem_to_hbm [thread:$0]  %s893_s8, 5120, %s1759_s2, [#allocation4], %s1044_s19, %s1044_s19, %s1045_s20  }
 0x230   :  { %1041 = dma.done.wait [#allocation4], 5120  }
 0x231   :  { %1042 = vsyncadd [#allocation4], 4294962176 }
 0x232   :  { %902 = vsyncpa [#allocation3], 1 }
 0x233   :  { %903 = vsyncpa [#allocation4], 1 }

</bundles_post_ra>
